<compile_context>
chip_gen: v7x
topology: tpu7x:2x2x1
jax: 0.10.0
libtpu: 0.0.40
codegen_flags: <defaults>
</compile_context>

<pallas_src>
import jax
import jax.numpy as jnp
from jax.experimental import pallas as pl
from jax.experimental.pallas import tpu as pltpu


STATE_DIM = 24      # BipedalWalker-v3 observation_space.shape[0]
ACTION_DIM = 4      # BipedalWalker-v3 action_space.shape[0]
HIDDEN_DIM = 128
HEAD_PAD = 128      # lane-dense fused head width: [mean(4) | value(1) | zeros]
DEFAULT_TB = 2048   # max batch-tile rows (amortizes per-step overhead)


def _round_up(n, m):
    return ((n + m - 1) // m) * m


def _choose_tiling(batch, tb):
    """Pick (TB, n_tiles) so that:
       * TB is sublane-aligned (multiple of 8) and <= tb,
       * the grid has an even number of >= 2 steps (v7x megacore balance),
       * padding is at most TB - 1 rows (tiles fit the batch, the batch is
         not rounded up to a multiple of the max tile)."""
    n_tiles = max(2, pl.cdiv(batch, tb))
    if n_tiles % 2:
        n_tiles += 1
    tile = _round_up(pl.cdiv(batch, n_tiles), 8)
    return tile, n_tiles


def _actor_critic_kernel(x_ref,
                         w1_ref, b1_ref,
                         w2_ref, b2_ref,
                         wh_ref, bh_ref,
                         out_ref):
    x = x_ref[...]                                            # (TB, state_dim) bf16

    # fc1 + tanh  (bf16 MXU matmul, f32 accumulate; tanh on EUP)
    h1 = jnp.tanh(
        jnp.dot(x, w1_ref[...], preferred_element_type=jnp.float32)
        + b1_ref[...])                                        # (TB, hidden) f32
    h1 = h1.astype(jnp.bfloat16)

    # fc2 + tanh
    h2 = jnp.tanh(
        jnp.dot(h1, w2_ref[...], preferred_element_type=jnp.float32)
        + b2_ref[...])                                        # (TB, hidden) f32
    h2 = h2.astype(jnp.bfloat16)

    # fused actor+critic head: one lane-dense matmul, one unmasked bf16 store.
    # columns [0:ACTION_DIM] = mean, column [ACTION_DIM] = value, rest padding.
    out_ref[...] = (
        jnp.dot(h2, wh_ref[...], preferred_element_type=jnp.float32)
        + bh_ref[...]).astype(out_ref.dtype)                  # (TB, HEAD_PAD) bf16


def prepare_params(params):
    """One-time parameter preparation (do NOT redo per forward call):
       fuse actor+critic heads into one lane-dense (hidden, HEAD_PAD) matrix
       and cast the matmul operands to bf16 (biases stay f32)."""
    (w1, b1, w2, b2, wa, ba, wc, bc, log_std) = params

    w_heads = jnp.zeros((HIDDEN_DIM, HEAD_PAD), jnp.float32)
    w_heads = w_heads.at[:, :ACTION_DIM].set(wa)
    w_heads = w_heads.at[:, ACTION_DIM:ACTION_DIM + 1].set(wc)
    b_heads = jnp.zeros((1, HEAD_PAD), jnp.float32)
    b_heads = b_heads.at[:, :ACTION_DIM].set(ba)
    b_heads = b_heads.at[:, ACTION_DIM:ACTION_DIM + 1].set(bc)

    return (w1.astype(jnp.bfloat16), b1.astype(jnp.float32),
            w2.astype(jnp.bfloat16), b2.astype(jnp.float32),
            w_heads.astype(jnp.bfloat16), b_heads.astype(jnp.float32),
            log_std.astype(jnp.float32))


def actor_critic_forward(x, prepared_params, tb=DEFAULT_TB):
    """Runs the ActorCritic forward pass in one Pallas kernel.

    `prepared_params` must come from prepare_params().  Returns
    (mean, std, state_value); (mean, std) parameterize the Normal action
    distribution, matching torch.distributions.Normal(mean, std).
    """
    B = x.shape[0]
    (w1, b1, w2, b2, w_heads, b_heads, log_std) = prepared_params

    # --- batch tiling: even >=2-step grid, tiles fit the batch ---
    TB, n_tiles = _choose_tiling(B, tb)
    B_pad = TB * n_tiles

    x = x.astype(jnp.bfloat16)
    if B_pad != B:
        x = jnp.pad(x, ((0, B_pad - B), (0, 0)))
    grid = (n_tiles,)

    out = pl.pallas_call(
        _actor_critic_kernel,
        out_shape=jax.ShapeDtypeStruct((B_pad, HEAD_PAD), jnp.bfloat16),
        grid=grid,
        in_specs=[
            pl.BlockSpec((TB, STATE_DIM), lambda i: (i, 0)),          # x tile
            pl.BlockSpec((STATE_DIM, HIDDEN_DIM), lambda i: (0, 0)),  # w1 (resident)
            pl.BlockSpec((1, HIDDEN_DIM), lambda i: (0, 0)),          # b1
            pl.BlockSpec((HIDDEN_DIM, HIDDEN_DIM), lambda i: (0, 0)), # w2
            pl.BlockSpec((1, HIDDEN_DIM), lambda i: (0, 0)),          # b2
            pl.BlockSpec((HIDDEN_DIM, HEAD_PAD), lambda i: (0, 0)),   # fused head W
            pl.BlockSpec((1, HEAD_PAD), lambda i: (0, 0)),            # fused head b
        ],
        out_specs=pl.BlockSpec((TB, HEAD_PAD), lambda i: (i, 0)),
        compiler_params=pltpu.CompilerParams(
            dimension_semantics=("parallel",)),                       # 2 TCs on v7x
    )(x, w1, b1, w2, b2, w_heads, b_heads)

    # lane-dense output -> slice heads out in the wrapper (free plumbing)
    mean = out[:B, :ACTION_DIM].astype(jnp.float32)
    value = out[:B, ACTION_DIM:ACTION_DIM + 1].astype(jnp.float32)
    # std is batch-independent: computed outside the kernel.
    # NOTE: shape (1, ACTION_DIM) (vs PyTorch's (ACTION_DIM,)); broadcasts the same.
    std = jnp.exp(log_std)
    return mean, std, value


def init_params(key, state_dim=STATE_DIM, action_dim=ACTION_DIM,
                hidden_dim=HIDDEN_DIM):
    """Deterministic init matching nn.Linear defaults:
    U(-1/sqrt(fan_in), 1/sqrt(fan_in)) for weights and biases; log = zeros."""
    def linear(k, fan_in, fan_out):
        kw, kb = jax.random.split(k)
        bound = 1.0 / jnp.sqrt(jnp.float32(fan_in))
        # stored as (in, out): transpose of PyTorch's (out, in) layout
        w = jax.random.uniform(kw, (fan_in, fan_out), jnp.float32,
                               minval=-bound, maxval=bound)
        b = jax.random.uniform(kb, (1, fan_out), jnp.float32,
                               minval=-bound, maxval=bound)
        return w, b

    k1, k2, k3, k4 = jax.random.split(key, 4)
    w1, b1 = linear(k1, state_dim, hidden_dim)
    w2, b2 = linear(k2, hidden_dim, hidden_dim)
    wa, ba = linear(k3, hidden_dim, action_dim)
    wc, bc = linear(k4, hidden_dim, 1)
    log_std = jnp.zeros((1, action_dim), jnp.float32)
    return (w1, b1, w2, b2, wa, ba, wc, bc, log_std)


def reference_forward(x, params):
    """Pure-JAX f32 reference for correctness checking."""
    (w1, b1, w2, b2, wa, ba, wc, bc, log_std) = params
    h1 = jnp.tanh(x @ w1 + b1)
    h2 = jnp.tanh(h1 @ w2 + b2)
    mean = h2 @ wa + ba
    value = h2 @ wc + bc
    std = jnp.exp(log_std)
    return mean, std, value


if __name__ == "__main__":
    key = jax.random.PRNGKey(0)
    k_params, k_x = jax.random.split(key)

    params = init_params(k_params)
    prepped = prepare_params(params)   # fused heads + bf16 casts, built once

    batch = 8
    x = jax.random.normal(k_x, (batch, STATE_DIM), jnp.float32)

    mean, std, value = actor_critic_forward(x, prepped)
    jax.block_until_ready((mean, std, value))

    # sanity check against the pure-JAX f32 reference (bf16 matmul tolerance)
    mean_r, std_r, value_r = reference_forward(x, params)
    assert jnp.allclose(mean, mean_r, atol=3e-2, rtol=3e-2), "mean mismatch"
    assert jnp.allclose(std, std_r, atol=1e-5), "std mismatch"
    assert jnp.allclose(value, value_r, atol=3e-2, rtol=3e-2), "value mismatch"
    assert mean.shape == (batch, ACTION_DIM)
    assert std.shape == (1, ACTION_DIM)
    assert value.shape == (batch, 1)

    # also exercise a non-trivial batch grid (multiple tiles, batch-fitting TB)
    big = 1200
    xb = jax.random.normal(jax.random.PRNGKey(1), (big, STATE_DIM), jnp.float32)
    mb, sb, vb = actor_critic_forward(xb, prepped)
    jax.block_until_ready((mb, sb, vb))
    mbr, sbr, vbr = reference_forward(xb, params)
    assert jnp.allclose(mb, mbr, atol=3e-2, rtol=3e-2), "big-batch mean mismatch"
    assert jnp.allclose(vb, vbr, atol=3e-2, rtol=3e-2), "big-batch value mismatch"
    assert mb.shape == (big, ACTION_DIM) and vb.shape == (big, 1)

    print("KERNEL_OK")
</pallas_src>

<mosaic_0001>
module attributes {stable_mosaic.version = 11 : i64} {
  func.func @_actor_critic_kernel(%arg0: i32, %arg1: memref<8x24xbf16, #tpu.memory_space<vmem>>, %arg2: memref<24x128xbf16, #tpu.memory_space<vmem>>, %arg3: memref<1x128xf32, #tpu.memory_space<vmem>>, %arg4: memref<128x128xbf16, #tpu.memory_space<vmem>>, %arg5: memref<1x128xf32, #tpu.memory_space<vmem>>, %arg6: memref<128x128xbf16, #tpu.memory_space<vmem>>, %arg7: memref<1x128xf32, #tpu.memory_space<vmem>>, %arg8: memref<8x128xbf16, #tpu.memory_space<vmem>>) attributes {dimension_semantics = [#tpu.dimension_semantics<parallel>], iteration_bounds = array<i64: 2>, scalar_prefetch = 0 : i64, scratch_operands = 0 : i64, tpu.core_type = #tpu.core_type<tc>, window_params = [{transform_indices = @transform_0, window_bounds = array<i64: 8, 24>}, {pipeline_mode = #tpu.pipeline_mode<synchronous>, transform_indices = @transform_1, window_bounds = array<i64: 24, 128>}, {pipeline_mode = #tpu.pipeline_mode<synchronous>, transform_indices = @transform_2, window_bounds = array<i64: 1, 128>}, {pipeline_mode = #tpu.pipeline_mode<synchronous>, transform_indices = @transform_3, window_bounds = array<i64: 128, 128>}, {pipeline_mode = #tpu.pipeline_mode<synchronous>, transform_indices = @transform_4, window_bounds = array<i64: 1, 128>}, {pipeline_mode = #tpu.pipeline_mode<synchronous>, transform_indices = @transform_5, window_bounds = array<i64: 128, 128>}, {pipeline_mode = #tpu.pipeline_mode<synchronous>, transform_indices = @transform_6, window_bounds = array<i64: 1, 128>}, {transform_indices = @transform_7, window_bounds = array<i64: 8, 128>}]} {
    %c0 = arith.constant 0 : index
    %c0_0 = arith.constant 0 : index
    %0 = vector.load %arg1[%c0, %c0_0] : memref<8x24xbf16, #tpu.memory_space<vmem>>, vector<8x24xbf16>
    %c0_1 = arith.constant 0 : index
    %c0_2 = arith.constant 0 : index
    %1 = vector.load %arg2[%c0_1, %c0_2] : memref<24x128xbf16, #tpu.memory_space<vmem>>, vector<24x128xbf16>
    %cst = arith.constant dense<0.000000e+00> : vector<8x128xf32>
    %2 = tpu.matmul %0, %1, %cst {dimension_numbers = #tpu.dot_dimension_numbers<[1], [0], [0], [1], [0, 0, 1, 1], [], []>} : vector<8x24xbf16>, vector<24x128xbf16>, vector<8x128xf32> -> vector<8x128xf32>
    %c0_3 = arith.constant 0 : index
    %c0_4 = arith.constant 0 : index
    %3 = vector.load %arg3[%c0_3, %c0_4] : memref<1x128xf32, #tpu.memory_space<vmem>>, vector<1x128xf32>
    %4 = vector.broadcast %3 : vector<1x128xf32> to vector<8x128xf32>
    %5 = arith.addf %2, %4 : vector<8x128xf32>
    %6 = math.tanh %5 : vector<8x128xf32>
    %7 = arith.truncf %6 : vector<8x128xf32> to vector<8x128xbf16>
    %c0_5 = arith.constant 0 : index
    %c0_6 = arith.constant 0 : index
    %8 = vector.load %arg4[%c0_5, %c0_6] : memref<128x128xbf16, #tpu.memory_space<vmem>>, vector<128x128xbf16>
    %cst_7 = arith.constant dense<0.000000e+00> : vector<8x128xf32>
    %9 = tpu.matmul %7, %8, %cst_7 {dimension_numbers = #tpu.dot_dimension_numbers<[1], [0], [0], [1], [0, 0, 1, 1], [], []>} : vector<8x128xbf16>, vector<128x128xbf16>, vector<8x128xf32> -> vector<8x128xf32>
    %c0_8 = arith.constant 0 : index
    %c0_9 = arith.constant 0 : index
    %10 = vector.load %arg5[%c0_8, %c0_9] : memref<1x128xf32, #tpu.memory_space<vmem>>, vector<1x128xf32>
    %11 = vector.broadcast %10 : vector<1x128xf32> to vector<8x128xf32>
    %12 = arith.addf %9, %11 : vector<8x128xf32>
    %13 = math.tanh %12 : vector<8x128xf32>
    %14 = arith.truncf %13 : vector<8x128xf32> to vector<8x128xbf16>
    %c0_10 = arith.constant 0 : index
    %c0_11 = arith.constant 0 : index
    %15 = vector.load %arg6[%c0_10, %c0_11] : memref<128x128xbf16, #tpu.memory_space<vmem>>, vector<128x128xbf16>
    %cst_12 = arith.constant dense<0.000000e+00> : vector<8x128xf32>
    %16 = tpu.matmul %14, %15, %cst_12 {dimension_numbers = #tpu.dot_dimension_numbers<[1], [0], [0], [1], [0, 0, 1, 1], [], []>} : vector<8x128xbf16>, vector<128x128xbf16>, vector<8x128xf32> -> vector<8x128xf32>
    %c0_13 = arith.constant 0 : index
    %c0_14 = arith.constant 0 : index
    %17 = vector.load %arg7[%c0_13, %c0_14] : memref<1x128xf32, #tpu.memory_space<vmem>>, vector<1x128xf32>
    %18 = vector.broadcast %17 : vector<1x128xf32> to vector<8x128xf32>
    %19 = arith.addf %16, %18 : vector<8x128xf32>
    %20 = arith.truncf %19 : vector<8x128xf32> to vector<8x128xbf16>
    %c0_15 = arith.constant 0 : index
    %c0_16 = arith.constant 0 : index
    %21 = vector.load %arg8[%c0_15, %c0_16] : memref<8x128xbf16, #tpu.memory_space<vmem>>, vector<8x128xbf16>
    tpu.vector_store %arg8[%c0_15, %c0_16], %20 {strides = array<i32>} : memref<8x128xbf16, #tpu.memory_space<vmem>>, vector<8x128xbf16>,
    return
  }
  func.func @transform_0(%arg0: i32) -> (i32, i32) {
    %c0_i32 = arith.constant 0 : i32
    %c0_i32_0 = arith.constant 0 : i32
    return %arg0, %c0_i32 : i32, i32
  }
  func.func @transform_1(%arg0: i32) -> (i32, i32) {
    %c0_i32 = arith.constant 0 : i32
    %c0_i32_0 = arith.constant 0 : i32
    %c0_i32_1 = arith.constant 0 : i32
    return %c0_i32, %c0_i32_0 : i32, i32
  }
  func.func @transform_2(%arg0: i32) -> (i32, i32) {
    %c0_i32 = arith.constant 0 : i32
    %c0_i32_0 = arith.constant 0 : i32
    %c0_i32_1 = arith.constant 0 : i32
    return %c0_i32, %c0_i32_0 : i32, i32
  }
  func.func @transform_3(%arg0: i32) -> (i32, i32) {
    %c0_i32 = arith.constant 0 : i32
    %c0_i32_0 = arith.constant 0 : i32
    %c0_i32_1 = arith.constant 0 : i32
    return %c0_i32, %c0_i32_0 : i32, i32
  }
  func.func @transform_4(%arg0: i32) -> (i32, i32) {
    %c0_i32 = arith.constant 0 : i32
    %c0_i32_0 = arith.constant 0 : i32
    %c0_i32_1 = arith.constant 0 : i32
    return %c0_i32, %c0_i32_0 : i32, i32
  }
  func.func @transform_5(%arg0: i32) -> (i32, i32) {
    %c0_i32 = arith.constant 0 : i32
    %c0_i32_0 = arith.constant 0 : i32
    %c0_i32_1 = arith.constant 0 : i32
    return %c0_i32, %c0_i32_0 : i32, i32
  }
  func.func @transform_6(%arg0: i32) -> (i32, i32) {
    %c0_i32 = arith.constant 0 : i32
    %c0_i32_0 = arith.constant 0 : i32
    %c0_i32_1 = arith.constant 0 : i32
    return %c0_i32, %c0_i32_0 : i32, i32
  }
  func.func @transform_7(%arg0: i32) -> (i32, i32) {
    %c0_i32 = arith.constant 0 : i32
    %c0_i32_0 = arith.constant 0 : i32
    return %arg0, %c0_i32 : i32, i32
  }
}

</mosaic_0001>

<bundles_post_ra>
// kernel: tpu_custom_call.1
= control target key start
LH: loop header
LB: loop body
LE: loop exit
PB: predicated region body
PF: predicated region fallthrough
CT: control target
= control target key end

     0   :  { %12 = vsyncpa [#allocation3], 0  ;;  %s1499_s0 = inlined_call_operand.hbm [shape: bf16[16,24], index: 0, kind: input, shape index: {}]   ;;  %s1500_s1 = inlined_call_operand.hbm [shape: bf16[24,128], index: 1, kind: input, shape index: {}]   ;;  %s1501_s2 = inlined_call_operand.vmem [shape: f32[1,128], index: 2, kind: input, shape index: {}]   ;;  %s1502_s3 = inlined_call_operand.hbm [shape: bf16[128,128], index: 3, kind: input, shape index: {}]   ;;  %s1503_s4 = inlined_call_operand.vmem [shape: f32[1,128], index: 4, kind: input, shape index: {}]   ;;  %s1504_s5 = inlined_call_operand.hbm [shape: bf16[128,128], index: 5, kind: input, shape index: {}]   ;;  %s1505_s6 = inlined_call_operand.vmem [shape: f32[1,128], index: 6, kind: input, shape index: {}]   ;;  %s1506_s7 = inlined_call_operand.hbm [shape: bf16[16,128], index: 7, kind: output, shape index: {}]  }
   0x1   :  { %14 = vsyncpa [#allocation3 + $0x1], 0 }
   0x2   :  { %15 = vsyncpa [#allocation6], 0 }
   0x3   :  { %16 = vsyncpa [#allocation9], 0 }
   0x4   :  { %17 = vsyncpa [#allocation4], 0 }
   0x5   :  { %19 = vsyncpa [#allocation4 + $0x1], 0  ;;  %s1199_s24 = smov 0   ;;  %s1201_s25 = smov 0  }
   0x6   :  { %s1203_s26 = smov 0   ;;  %s1205_s27 = smov 0  }
   0x7 LB: > { %s1220_s28 = sadd.s32 4294967295, %s1148_s27   ;;  %s748_s29 = sadd.s32 4294967294, %s1148_s27   ;;  %s1148_s27 = sphi %s1205_s27, %s1532_s27   ;;  %s1144_s26 = sphi %s1203_s26, %s1531_s26   ;;  %s1140_s25 = sphi %s1201_s25, %s1530_s25   ;;  %s1136_s24 = sphi %s1199_s24, %s1529_s24  }
   0x8   : > { %p45_p0 = scmp.ne.s32.totalorder %s1140_s25, %s1136_s24  ;;  %p1507_p1 = scmp.eq.s32.totalorder %s1220_s28, 0 }
   0x9   : > { %p201_p3 = scmp.eq.s32.totalorder %s748_s29, 1  ;;  %p749_p5 = scmp.ge.s32.totalorder %s1148_s27, 1 }
   0xa   : > { %p1229_p4 = por %p1507_p1, %p45_p0  ;;  %p208_p7 = scmp.lt.s32.totalorder %s1148_s27, 3 }
   0xb   : > { %p1234_p6 = por %p201_p3, %p45_p0  ;;  %s1150_s10 = smov [#allocation5]  }
   0xc   : > { %s1511_s30 = scalar_select %p1229_p4, 1, 0 }
   0xd   : > { %s1512_s8 = scalar_select %p1234_p6, 1, 0 }
   0xe   : > { %p1239_p8 = pnand %p749_p5, %p208_p7  ;;  %s220_s11 = sshll.u32 %s1150_s10, 4  ;;  %s1243_s11 = int_to_ptr.vmem [resolvable:$true] %s220_s11 }
   0xf   : > { %1513 = sst [smem:[#allocation15_spill]] %s1512_s8  ;;  %s1151_s13 = smov [#allocation7]  }
  0x10   : > { %s1514_s9 = scalar_select %p1239_p8, 1, 0 }
  0x11   : > { %p873_p9 = pneg %p1239_p8  ;;  %s236_s14 = sshll.u32 %s1151_s13, 4  ;;  %s1254_s14 = int_to_ptr.vmem [resolvable:$true] %s236_s14 }
  0x12   : > { %s1152_s15 = smov [#allocation8]   ;;  %s960_s19 = scalar_lea.hbm %s1500_s1, 192 }
  0x13   : > { %p1250_p11 = pnand %p873_p9, %p1507_p1  ;;  %s1256_s16 = sshll.u32 %s1152_s15, 4  ;;  %s253_s16 = int_to_ptr.vmem [resolvable:$true] %s1256_s16 }
  0x14   : > { %p961_p12 = scmp.ne.s32.totalorder %s1500_s1, %s960_s19  ;;  %p967_p5 = scmp.lt.u32.totalorder %s960_s19, %s1500_s1 }
  0x15   : > { %p1266_p13 = pneg %p1250_p11 }
  0x17   : > { %p963_p0 = pnand %p1266_p13, %p961_p12 }
  0x19   : > { %p964_p3 = pneg %p963_p0 }
  0x1b   : > { %p969_p7 = pnand %p967_p5, %p964_p3 }
  0x1d   : > { %972 = shalt.err (!%p969_p7)
}
  0x1e   : > { %s973_s10 = scalar_lea.vmem %s1243_s11, 192  ;;  %p981_p2 = scmp.lt.s32.totalorder %s1243_s11, %s1243_s11 }
  0x1f   : > { %p974_p9 = scmp.ne.s32.totalorder %s1243_s11, %s973_s10  ;;  %p982_p6 = scmp.lt.s32.totalorder %s973_s10, %s973_s10 }
  0x21   : > { %p976_p10 = pnand %p974_p9, %p1266_p13  ;;  %p983_p12 = por %p982_p6, %p981_p2 }
  0x23   : > { %p977_p1 = pneg %p976_p10 }
  0x25   : > { %p984_p0 = pnand %p983_p12, %p977_p1 }
  0x27   : > { %987 = shalt.err (!%p984_p0)
}
  0x28   : > { %s1153_s13 = smov 64   ;;  %s1154_s15 = smov 4  }
  0x29   : > { %876 = dma.hbm_to_vmem [thread:$0]  (!%p1250_p11), %s1500_s1, 192, %s1243_s11, [#allocation6], %s1153_s13, %s1153_s13, %s1154_s15  }
  0x2a   : > { %s988_s21 = scalar_lea.hbm %s1502_s3, 1024 }
  0x2b   : > { %p989_p1 = scmp.ne.s32.totalorder %s1502_s3, %s988_s21  ;;  %p995_p10 = scmp.lt.u32.totalorder %s988_s21, %s1502_s3 }
  0x2d   : > { %p991_p2 = pnand %p989_p1, %p1266_p13 }
  0x2f   : > { %p992_p6 = pneg %p991_p2 }
  0x31   : > { %p997_p3 = pnand %p995_p10, %p992_p6 }
  0x33   : > { %1000 = shalt.err (!%p997_p3)
}
  0x34   : > { %s1001_s11 = scalar_lea.vmem %s1254_s14, 1024  ;;  %p1009_p12 = scmp.lt.s32.totalorder %s1254_s14, %s1254_s14 }
  0x35   : > { %p1002_p5 = scmp.ne.s32.totalorder %s1254_s14, %s1001_s11  ;;  %p1010_p0 = scmp.lt.s32.totalorder %s1001_s11, %s1001_s11 }
  0x37   : > { %p1004_p7 = pnand %p1002_p5, %p1266_p13  ;;  %p1011_p1 = por %p1010_p0, %p1009_p12 }
  0x39   : > { %p1005_p9 = pneg %p1004_p7 }
  0x3b   : > { %p1012_p2 = pnand %p1011_p1, %p1005_p9 }
  0x3d   : > { %1015 = shalt.err (!%p1012_p2)
}
  0x3e   : > { %879 = dma.hbm_to_vmem [thread:$0]  (!%p1250_p11), %s1502_s3, 1024, %s1254_s14, [#allocation6], %s1153_s13, %s1153_s13, %s1154_s15  }
  0x3f   : > { %s1016_s20 = scalar_lea.hbm %s1504_s5, 1024 }
  0x40   : > { %p1017_p6 = scmp.ne.s32.totalorder %s1504_s5, %s1016_s20  ;;  %p1023_p5 = scmp.lt.u32.totalorder %s1016_s20, %s1504_s5 }
  0x42   : > { %p1019_p10 = pnand %p1017_p6, %p1266_p13 }
  0x44   : > { %p1020_p3 = pneg %p1019_p10 }
  0x46   : > { %p1025_p7 = pnand %p1023_p5, %p1020_p3 }
  0x48   : > { %1028 = shalt.err (!%p1025_p7)
}
  0x49   : > { %s1029_s11 = scalar_lea.vmem %s253_s16, 1024  ;;  %p1037_p1 = scmp.lt.s32.totalorder %s253_s16, %s253_s16 }
  0x4a   : > { %p1030_p9 = scmp.ne.s32.totalorder %s253_s16, %s1029_s11  ;;  %p1038_p2 = scmp.lt.s32.totalorder %s1029_s11, %s1029_s11 }
  0x4c   : > { %p1032_p12 = pnand %p1030_p9, %p1266_p13  ;;  %p1039_p4 = por %p1038_p2, %p1037_p1 }
  0x4e   : > { %p1033_p0 = pneg %p1032_p12 }
  0x50   : > { %p1040_p8 = pnand %p1039_p4, %p1033_p0 }
  0x52   : > { %1043 = shalt.err (!%p1040_p8)
}
  0x53   : > { %882 = dma.hbm_to_vmem [thread:$0]  (!%p1250_p11), %s1504_s5, 1024, %s253_s16, [#allocation9], %s1153_s13, %s1153_s13, %s1154_s15  }
  0x54   : > { %s1339_s22 = sadd.s32 1, %s1148_s27   ;;  %s32_s17 = sadd.s32 1, %s1144_s26 }
  0x55   : > { %s29_s12 = ssub.s32 %s1148_s27, %s1339_s22  ;;  %p39_p8 = scmp.ne.s32.totalorder %s1144_s26, %s1140_s25 }
  0x56   : > { %p30_p4 = scmp.eq.s32.totalorder %s29_s12, 0  ;;  %p40_p13 = scmp.eq.s32.totalorder %s1148_s27, 0 }
  0x57   : > { %p894_p6 = scmp.lt.s32.totalorder %s1148_s27, 2  ;;  %p1517_p3 = scmp.eq.s32.totalorder %s1220_s28, 1 }
  0x58   : > { %s1349_s18 = scalar_select %p30_p4, %s1144_s26, %s32_s17  }
  0x59   : > { %p41_p10 = por %p40_p13, %p39_p8  ;;  %p1353_p5 = por %p1517_p3, %p39_p8 }
  0x5a   : > { %s269_s20 = sand.u32 1, %s1144_s26   ;;  %s755_s21 = sshll.u32 %s1148_s27, 6 }
  0x5b   : > { %s754_s16 = sshll.u32 %s269_s20, 2  ;;  %s1362_s23 = scalar_lea.hbm %s1499_s0, %s755_s21 }
  0x5c   : > { %s273_s29 = scalar_lea.vmem [#allocation2], %s754_s16  ;;  %p1364_p11 = pnand %p894_p6, %p41_p10 }
  0x5d   : > { %s280_s10 = sshll.u32 %s273_s29, 4  ;;  %s270_s14 = scalar_lea.sflag [#allocation3], %s269_s20  ;;  %s1368_s10 = int_to_ptr.vmem [resolvable:$true] %s280_s10 }
  0x5e   : > { %s1044_s8 = scalar_lea.hbm %s1362_s23, 64  ;;  %p1046_p9 = pneg %p1364_p11 }
  0x5f   : > { %p1045_p7 = scmp.ne.s32.totalorder %s1362_s23, %s1044_s8  ;;  %s1049_s21 = scalar_lea.hbm %s1499_s0, 128 }
  0x60   : > { %p1050_p1 = scmp.lt.u32.totalorder %s1362_s23, %s1499_s0  ;;  %p1051_p2 = scmp.lt.u32.totalorder %s1049_s21, %s1044_s8 }
  0x61   : > { %p1047_p12 = pnand %p1046_p9, %p1045_p7  ;;  %p1053_p8 = scmp.lt.u32.totalorder %s1044_s8, %s1362_s23 }
  0x62   : > { %p1052_p4 = por %p1051_p2, %p1050_p1 }
  0x63   : > { %p1048_p0 = pneg %p1047_p12 }
  0x64   : > { %p1054_p13 = por %p1053_p8, %p1052_p4 }
  0x66   : > { %p1055_p6 = pnand %p1054_p13, %p1048_p0 }
  0x68   : > { %1058 = shalt.err (!%p1055_p6)
}
  0x69   : > { %s1059_s20 = scalar_lea.vmem %s1368_s10, 64  ;;  %s1155_s15 = smov [#allocation2]  }
  0x6a   : > { %p1060_p10 = scmp.ne.s32.totalorder %s1368_s10, %s1059_s20  ;;  %s1064_s29 = sshll.u32 %s1155_s15, 4  ;;  %s1065_s29 = int_to_ptr.vmem [resolvable:$false] %s1064_s29 }
  0x6b   : > { %s1066_s12 = scalar_lea.vmem %s1065_s29, 128  ;;  %p1067_p12 = scmp.lt.s32.totalorder %s1368_s10, %s1065_s29 }
  0x6c   : > { %p1062_p3 = pnand %p1060_p10, %p1046_p9  ;;  %p1068_p1 = scmp.lt.s32.totalorder %s1066_s12, %s1059_s20 }
  0x6e   : > { %p1063_p7 = pneg %p1062_p3  ;;  %p1069_p2 = por %p1068_p1, %p1067_p12 }
  0x70   : > { %p1070_p4 = pnand %p1069_p2, %p1063_p7 }
  0x72   : > { %1073 = shalt.err (!%p1070_p4)
}
  0x73   : > { %886 = dma.hbm_to_vmem [thread:$0]  (!%p1364_p11), %s1362_s23, 64, %s1368_s10, %s270_s14  }
  0x74   : > { %p1520_p0 = scmp.ne.s32.totalorder %s1514_s9, 0 }
  0x75   : > { %s1398_s8 = sand.u32 (!%p1520_p0), 1, %s1140_s25   ;;  %p1521_p9 = scmp.ne.s32.totalorder (!%p1520_p0), %s1511_s30, 0 }
  0x76   : > { %289 = sbr.rel (%p1520_p0) target bundleno = 827 (0x33b), region = 48  ;;  %s757_s17 = sshll.u32 (!%p1520_p0), %s1398_s8, 2 }
  0x77   : > { %s292_s21 = scalar_lea.sflag (!%p1520_p0), [#allocation3], %s1398_s8  ;;  %s295_s16 = scalar_lea.vmem (!%p1520_p0), [#allocation2], %s757_s17 }
  0x7d   : > { %1119 = dma.done.wait (%p1521_p9), %s292_s21, 64  }
  0x7e   : > { %1121 = vsyncadd (%p1521_p9), %s292_s21, 4294967232  ;;  %p1522_p11 = scmp.eq.s32.totalorder %s1220_s28, 0 }
  0x80   : > { %1123 = dma.done.wait (%p1522_p11), [#allocation6], 1216   ;;  %p1523_p8 = pmov %p1522_p11 }
  0x82   : > { %1125 = vsyncadd (%p1523_p8), [#allocation6], 4294966080  ;;  %p1524_p13 = pmov %p1523_p8 }
  0x83   : > { %p1525_p6 = pmov %p1523_p8 }
  0x84   : > { %1127 = dma.done.wait (%p1524_p13), [#allocation9], 1024  }
  0x85   : > { %1129 = vsyncadd (%p1525_p6), [#allocation9], 4294966272  ;;  %v1156_v0 = vmov 0.0   ;;  %vm1157_vm0 = vmmov 0   ;;  %v938_v1 = vld [vmem:[#allocation5] sm:$0xff]   ;;  %vm363_vm1 = vcmask 1043456  }
  0x86   : > { %809 = vmatprep.subr.bf16.mxu0 %v1156_v0  ;;  %813 = vmatprep.mubr.msk.bf16.mxu0 %vm1157_vm0, %v1156_v0  ;;  %v939_v2 = vld [vmem:[#allocation5 + $0x8] ss:$0 sps:$4 sm:$0xff]   ;;  %v940_v3 = vld [vmem:[#allocation7] sm:$0xff]   ;;  %v941_v5 = vld [vmem:[#allocation7 + $0x8] sm:$0xff]   ;;  %vm359_vm2 = vcmask 195584   ;;  %s785_s13 = sshll.u32 %s1220_s28, 6 }
  0x87   : > { %817 = vmatprep.subr.bf16.mxu1 %v1156_v0  ;;  %833 = vmatprep.mubr.msk.bf16.mxu1 %vm1157_vm0, %v1156_v0  ;;  %v365_v4 = vsel %vm363_vm1, %v939_v2, 0  ;;  %v339_v6 = vld [vmem:[%s295_s16] sm:$0xf]  ;;  %v943_v8 = vld [vmem:[#allocation7 + $0x18] sm:$0xff]   ;;  %v944_v9 = vld [vmem:[#allocation7 + $0x20] sm:$0xff]   ;;  %s337_s20 = scalar_lea.vmem [#allocation10], %s757_s17  ;;  %s1455_s21 = scalar_lea.hbm %s1506_s7, %s785_s13 }
  0x88   : > { %810 = vmatpush3.bf16.msra.mxu0 %v938_v1  ;;  %818 = vmatpush3.bf16.msra.mxu1 %v940_v3  ;;  %v942_v7 = vld [vmem:[#allocation7 + $0x10] sm:$0xff]   ;;  %v945_v10 = vld [vmem:[#allocation7 + $0x28] sm:$0xff]   ;;  %v947_v12 = vld [vmem:[#allocation7 + $0x38] sm:$0xff]   ;;  %s649_s15 = sshll.u32 %s337_s20, 4  ;;  %s636_s28 = scalar_lea.sflag [#allocation4], %s1398_s8  ;;  %s1457_s15 = int_to_ptr.vmem [resolvable:$true] %s649_s15 }
  0x89   : > { %811 = vmatprep.subr.bf16.mxu0 %v1156_v0  ;;  %819 = vmatprep.subr.bf16.mxu1 %v1156_v0  ;;  %v946_v11 = vld [vmem:[#allocation7 + $0x30] sm:$0xff]   ;;  %v948_v13 = vld [vmem:[#allocation8] sm:$0xff]   ;;  %v949_v14 = vld [vmem:[#allocation8 + $0x8] sm:$0xff]   ;;  %s1074_s16 = scalar_lea.vmem %s1457_s15, 64  ;;  %s1158_s17 = smov [#allocation10]  }
  0x8a   : > { %v950_v15 = vld [vmem:[#allocation8 + $0x10] sm:$0xff]   ;;  %v951_v16 = vld [vmem:[#allocation8 + $0x18] sm:$0xff]   ;;  %v762_v17 = vld [vmem:[%s1501_s2] ss:$0 sm:$0xff]  ;;  %p1075_p10 = scmp.ne.s32.totalorder %s1457_s15, %s1074_s16  ;;  %s1078_s30 = sshll.u32 %s1158_s17, 4  ;;  %s1079_s30 = int_to_ptr.vmem [resolvable:$false] %s1078_s30 }
  0x8b   : > { %v952_v25 = vld [vmem:[#allocation8 + $0x20] sm:$0xff]   ;;  %v953_v26 = vld [vmem:[#allocation8 + $0x28] sm:$0xff]   ;;  %v954_v27 = vld [vmem:[#allocation8 + $0x30] sm:$0xff]   ;;  %s1080_s9 = scalar_lea.vmem %s1079_s30, 128  ;;  %p1081_p12 = scmp.lt.s32.totalorder %s1457_s15, %s1079_s30 }
  0x8c   : > { %812 = vmatpush3.bf16.msra.mxu0 %v365_v4  ;;  %820 = vmatpush3.bf16.msra.mxu1 %v941_v5  ;;  %v955_v28 = vld [vmem:[#allocation8 + $0x38] sm:$0xff]   ;;  %v766_v29 = vld [vmem:[%s1503_s4] ss:$0 sm:$0xff]  ;;  %p1076_p3 = pnand %p1075_p10, %p1353_p5  ;;  %p1082_p1 = scmp.lt.s32.totalorder %s1080_s9, %s1074_s16 }
  0x8d   : > { %837 = vmatprep.subr.bf16.mxu0 %v1156_v0  ;;  %821 = vmatprep.subr.bf16.mxu1 %v1156_v0  ;;  %v775_v37 = vld [vmem:[%s1505_s6] ss:$0 sm:$0xff] }
  0x8e   : > { %p1077_p7 = pneg %p1076_p3  ;;  %p1083_p2 = por %p1082_p1, %p1081_p12 }
  0x8f   : > { %814 = vmatmul.mubr.msk.bf16.vlgmr.msra.gmra.mrb[0].mxu0 %vm359_vm2, %v339_v6 }
  0x90   : > { %853 = vmatprep.mubr.msk.bf16.mxu0 %vm1157_vm0, %v1156_v0  ;;  %822 = vmatpush3.bf16.msra.mxu1 %v942_v7  ;;  %p1084_p4 = pnand %p1083_p2, %p1077_p7 }
  0x91   : > { %823 = vmatprep.subr.bf16.mxu1 %v1156_v0  ;;  %838 = vmatpush3.bf16.msra.mxu0 %v948_v13 }
  0x92   : > { %839 = vmatprep.subr.bf16.mxu0 %v1156_v0 }
  0x94   : > { %824 = vmatpush3.bf16.msra.mxu1 %v943_v8 }
  0x95   : > { %825 = vmatprep.subr.bf16.mxu1 %v1156_v0  ;;  %840 = vmatpush3.bf16.msra.mxu0 %v949_v14 }
  0x96   : > { %841 = vmatprep.subr.bf16.mxu0 %v1156_v0 }
  0x98   : > { %826 = vmatpush3.bf16.msra.mxu1 %v944_v9 }
  0x99   : > { %827 = vmatprep.subr.bf16.mxu1 %v1156_v0  ;;  %842 = vmatpush3.bf16.msra.mxu0 %v950_v15 }
  0x9a   : > { %843 = vmatprep.subr.bf16.mxu0 %v1156_v0 }
  0x9c   : > { %828 = vmatpush3.bf16.msra.mxu1 %v945_v10 }
  0x9d   : > { %829 = vmatprep.subr.bf16.mxu1 %v1156_v0  ;;  %844 = vmatpush3.bf16.msra.mxu0 %v951_v16 }
  0x9e   : > { %845 = vmatprep.subr.bf16.mxu0 %v1156_v0 }
  0xa0   : > { %830 = vmatpush3.bf16.msra.mxu1 %v946_v11 }
  0xa1   : > { %831 = vmatprep.subr.bf16.mxu1 %v1156_v0  ;;  %846 = vmatpush3.bf16.msra.mxu0 %v952_v25 }
  0xa2   : > { %847 = vmatprep.subr.bf16.mxu0 %v1156_v0 }
  0xa4   : > { %832 = vmatpush3.bf16.msra.mxu1 %v947_v12 }
  0xa5   : > { %848 = vmatpush3.bf16.msra.mxu0 %v953_v26 }
  0xa6   : > { %849 = vmatprep.subr.bf16.mxu0 %v1156_v0 }
  0xa9   : > { %850 = vmatpush3.bf16.msra.mxu0 %v954_v27 }
  0xaa   : > { %851 = vmatprep.subr.bf16.mxu0 %v1156_v0 }
  0xad   : > { %852 = vmatpush3.bf16.msra.mxu0 %v955_v28 }
 0x162   : > { %v401_v18 = vpop.f32.mrb[0].mxu0 }
 0x163   : > { %v402_v19 = vadd.f32 %v762_v17, %v401_v18  ;;  %v815_v20 = vpop.f32.mrb[1].mxu0 }
 0x164   : > { %v404_v21 = vpop.f32.mrb[2].mxu0 }
 0x165   : > { %956 = vtanh.f32 %v402_v19  ;;  %v816_v22 = vpop.f32.mrb[3].mxu0 }
 0x16f   : > { %v957_v23 = vpop.eup %956 }
 0x170   : > { %v408_v24 = vpack.c.bf16 %v957_v23, %v957_v23 }
 0x172   : > { %834 = vmatmul.mubr.bf16.vlgmr.msra.gmra.mrb[0].mxu1 %v408_v24 }
 0x245   : > { %v514_v30 = vpop.f32.mrb[0].mxu1 }
 0x246   : > { %v515_v31 = vadd.f32 %v766_v29, %v514_v30  ;;  %v835_v32 = vpop.f32.mrb[1].mxu1 }
 0x247   : > { %v517_v33 = vpop.f32.mrb[2].mxu1 }
 0x248   : > { %958 = vtanh.f32 %v515_v31  ;;  %v836_v34 = vpop.f32.mrb[3].mxu1 }
 0x252   : > { %v959_v35 = vpop.eup %958 }
 0x253   : > { %v521_v36 = vpack.c.bf16 %v959_v35, %v959_v35 }
 0x255   : > { %854 = vmatmul.mubr.bf16.vlgmr.msra.gmra.mrb[4].mxu0 %v521_v36 }
 0x328   : > { %v627_v38 = vpop.f32.mrb[4].mxu0 }
 0x329   : > { %v628_v39 = vadd.f32 %v775_v37, %v627_v38  ;;  %v855_v40 = vpop.f32.mrb[5].mxu0 }
 0x32a   : > { %v630_v41 = vpop.f32.mrb[6].mxu0 }
 0x32b   : > { %v633_v42 = vpack.c.bf16 %v628_v39, %v628_v39  ;;  %v856_v43 = vpop.f32.mrb[7].mxu0 }
 0x32d   : > { %634 = vst [vmem:[%s337_s20] sm:$0xf] %v633_v42 }
 0x32e   : > { %1087 = shalt.err (!%p1084_p4)
}
 0x32f   : > { %s1088_s8 = scalar_lea.hbm %s1455_s21, 64  ;;  %s1092_s11 = scalar_lea.hbm %s1506_s7, 128 }
 0x330   : > { %p1089_p0 = scmp.ne.s32.totalorder %s1455_s21, %s1088_s8  ;;  %p1093_p8 = scmp.lt.u32.totalorder %s1455_s21, %s1506_s7 }
 0x331   : > { %p1094_p13 = scmp.lt.u32.totalorder %s1092_s11, %s1088_s8  ;;  %p1096_p10 = scmp.lt.u32.totalorder %s1088_s8, %s1455_s21 }
 0x332   : > { %p1090_p9 = pnand %p1089_p0, %p1353_p5 }
 0x333   : > { %p1095_p6 = por %p1094_p13, %p1093_p8 }
 0x334   : > { %p1091_p11 = pneg %p1090_p9 }
 0x335   : > { %p1097_p3 = por %p1096_p10, %p1095_p6 }
 0x337   : > { %p1098_p7 = pnand %p1097_p3, %p1091_p11 }
 0x339   : > { %1101 = shalt.err (!%p1098_p7)
}
 0x33a   : > { %871 = dma.vmem_to_hbm [thread:$0]  (%p1353_p5), %s1457_s15, 64, %s1455_s21, %s636_s28  }
 0x33b PF: > { %s1526_s20 = sld [smem:[#allocation15_spill]]  ;;  %s661_s29 = sand.u32 1, %s1136_s24  }
 0x33c   : > { %p1528_p1 = scmp.ge.s32.totalorder %s1148_s27, 2  ;;  %s662_s12 = scalar_lea.sflag [#allocation4], %s661_s29 }
 0x341   : > { %p1527_p12 = scmp.ne.s32.totalorder %s1526_s20, 0 }
 0x343   : > { %p888_p2 = pnand %p1528_p1, %p1527_p12 }
 0x345   : > { %1131 = dma.done.wait (!%p888_p2), %s662_s12, 64  }
 0x346   : > { %1133 = vsyncadd (!%p888_p2), %s662_s12, 4294967232  ;;  %p22_p4 = scmp.ge.s32.totalorder %s1339_s22, 4   ;;  %s1529_s24 = smov %s1140_s25 }
 0x347   : > { %s1530_s25 = smov %s1144_s26  ;;  %s1531_s26 = smov %s1349_s18 }
 0x348   : > { %s1532_s27 = smov %s1339_s22  ;;  %24 = sbr.rel (!%p22_p4) target bundleno = 7 (0x7), region = 105 }
 0x34f   :  { %667 = vsyncpa [#allocation3], 1 }
 0x350   :  { %669 = vsyncpa [#allocation3 + $0x1], 1 }
 0x351   :  { %670 = vsyncpa [#allocation6], 1 }
 0x352   :  { %671 = vsyncpa [#allocation9], 1 }
 0x353   :  { %672 = vsyncpa [#allocation4], 1 }
 0x354   :  { %674 = vsyncpa [#allocation4 + $0x1], 1 }

</bundles_post_ra>
